<compile_context>
chip_gen: v5e
topology: v5e:2x2
jax: 0.10.0
libtpu: 0.0.40
codegen_flags: <defaults>
</compile_context>

<pallas_src>
import jax
import jax.numpy as jnp
from jax.experimental import pallas as pl
from jax.experimental.pallas import tpu as pltpu


def _noise_injection_kernel(w_ref, img_ref, noise_ref, out_ref):
    # w_ref    : SMEM (1,) f32        -- scalar weight
    # img_ref  : VMEM (1, tc, ts)
    # noise_ref: VMEM (1, 1, ts)      -- broadcast across the channel tile
    # out_ref  : VMEM (1, tc, ts)
    w = w_ref[0]
    img = img_ref[...].astype(jnp.float32)
    noise = noise_ref[...].astype(jnp.float32)
    out_ref[...] = (img + w * noise).astype(out_ref.dtype)


_TS_CANDIDATES = (16384, 8192, 4096, 2048, 1024, 512, 256, 128)


def _vmem_budget():
    """(vmem_limit_bytes, usable_pipeline_bytes) for this chip generation."""
    try:
        cap = int(pltpu.get_tpu_info().vmem_capacity_bytes)
    except Exception:
        cap = 64 << 20                       # conservative (v7x per-core VMEM)
    vmem_limit = int(min(cap // 2, 64 << 20))  # ~32 MiB on v7x, 64 MiB on v5e/v6e
    usable = int(0.75 * vmem_limit)            # headroom for compiler scratch
    return vmem_limit, usable


def _choose_tiles(C, S, itemsize, usable_bytes):
    """Pick (tc, ts) block dims for (1, tc, ts) image/output blocks.

    ts is a multiple of 128 (or the full S), tc is the full C or a multiple of
    the dtype's sublane pack factor, and the double-buffered pipeline
    (2 x image + 2 x output + 2 x sublane-padded noise) stays <= usable_bytes.
    """
    pack = max(8, 32 // itemsize)            # 8 (f32), 16 (bf16), 32 (int8/fp8)

    def cost(tc, ts):
        # 2 buffers each of: image block + output block + the (1,1,ts) noise
        # slab whose single row pads to a full 32-byte-deep sublane tile.
        return 2 * (2 * tc * ts * itemsize + 32 * ts)

    if S < 128:
        ts_list = [S]                                    # full lane dim (legal)
    elif S % 128 == 0:
        ts_list = [t for t in _TS_CANDIDATES if t <= S]
    else:
        ts_list = [t for t in _TS_CANDIDATES if t <= S]  # masked edge block
        if S <= 4096:
            ts_list = [S] + ts_list                      # single full-S block

    tc_list = [C] + [m for m in (256, 128, 64, 32, 16, 8)
                     if m % pack == 0 and m < C]

    for tc in tc_list:                 # prefer full C (no channel re-tiling,
        for ts in ts_list:             # fewer steps), then the widest lane tile
            if cost(tc, ts) <= usable_bytes:
                return tc, ts
    return tc_list[-1], ts_list[-1]    # pathological budget: smallest block


def _grow_grid(B, C, S, tc, ts, min_steps=4):
    """Shrink the lane tile for tiny inputs so the all-parallel grid has at
    least `min_steps` steps (keeps both v7x TensorCores busy)."""
    def steps(ts_):
        return B * (-(-C // tc)) * (-(-S // ts_))

    while steps(ts) < min_steps and ts > 128 and ts % 128 == 0:
        new_ts = max(128, ((ts // 2) // 128) * 128)
        if new_ts == ts:
            break
        ts = new_ts
    return ts


def noise_injection(image, weight, noise=None, *, key=None, donate_image=False):
    """Pallas implementation of NoiseInjection.forward: image + weight * noise.

    image : (B, C, H, W) float array
    weight: scalar / (1,) parameter
    noise : optional (B, 1, H, W); if None, sampled ~ N(0,1) with `key`
            (a fresh key is required so noise differs per forward call,
             matching torch.randn semantics).
    donate_image: alias the image buffer to the output (only safe if the
            caller does not use `image` afterwards).
    """
    B, C, H, W = image.shape
    if noise is None:
        if key is None:
            raise ValueError(
                "noise_injection: pass `noise` or a fresh PRNG `key` "
                "(silent reuse of a fixed key would freeze the noise)."
            )
        # TODO(synk): fuse noise generation into the kernel with
        # pltpu.prng_seed + pltpu.stateful_normal seeded per (b, si) block, to
        # drop the separate randn kernel and its HBM round-trip for small C.
        noise = jax.random.normal(key, (B, 1, H, W), dtype=image.dtype)
    assert noise.shape == (B, 1, H, W), noise.shape

    # Keep the parameter in f32; the broadcast math runs in f32 in-kernel.
    weight = jnp.asarray(weight, dtype=jnp.float32).reshape((1,))

    S = H * W
    img2 = image.reshape(B, C, S)      # lane-dense spatial dim -> full-width vst
    noise2 = noise.reshape(B, 1, S)

    itemsize = jnp.dtype(image.dtype).itemsize
    vmem_limit, usable = _vmem_budget()
    tc, ts = _choose_tiles(C, S, itemsize, usable)
    ts = _grow_grid(B, C, S, tc, ts)

    # Channel-tile axis innermost: the noise block index (b, 0, si) is then
    # unchanged across consecutive steps, so its DMA is not re-issued.
    grid = (B, pl.cdiv(S, ts), pl.cdiv(C, tc))

    kwargs = {}
    if donate_image:
        # operand order: (weight, image, noise) -> image is input index 1
        kwargs["input_output_aliases"] = {1: 0}

    out = pl.pallas_call(
        _noise_injection_kernel,
        out_shape=jax.ShapeDtypeStruct((B, C, S), image.dtype),
        grid=grid,
        in_specs=[
            # scalar weight, untiled, in SMEM
            pl.BlockSpec(memory_space=pltpu.MemorySpace.SMEM),
            # lane-dense image tile
            pl.BlockSpec((1, tc, ts), lambda b, si, ci: (b, ci, si)),
            # matching noise slab (channel dim is 1, broadcast in-kernel)
            pl.BlockSpec((1, 1, ts), lambda b, si, ci: (b, 0, si)),
        ],
        out_specs=pl.BlockSpec((1, tc, ts), lambda b, si, ci: (b, ci, si)),
        compiler_params=pltpu.CompilerParams(
            dimension_semantics=("parallel", "parallel", "parallel"),
            vmem_limit_bytes=vmem_limit,
        ),
        **kwargs,
    )(weight, img2, noise2)

    return out.reshape(B, C, H, W)


def _check(key, B, C, H, W, dtype=jnp.float32, atol=1e-6):
    k_img, k_noise = jax.random.split(key)
    image = jax.random.normal(k_img, (B, C, H, W), dtype=jnp.float32).astype(dtype)
    noise = jax.random.normal(k_noise, (B, 1, H, W), dtype=jnp.float32).astype(dtype)
    # Parameter init is torch.zeros(1); use a nonzero value so the
    # broadcast-add path is actually exercised.
    weight = jnp.full((1,), 0.5, dtype=jnp.float32)

    out = noise_injection(image, weight, noise)
    out = jax.block_until_ready(out)

    ref = (image.astype(jnp.float32) + weight[0] * noise.astype(jnp.float32)).astype(dtype)
    assert out.shape == (B, C, H, W)
    assert out.dtype == image.dtype
    assert jnp.allclose(out.astype(jnp.float32), ref.astype(jnp.float32), atol=atol), \
        f"mismatch at {(B, C, H, W)} {dtype}"


if __name__ == "__main__":
    key = jax.random.PRNGKey(0)
    k0, k1, k2, k3 = jax.random.split(key, 4)

    # Small shape matching the module's typical use.
    _check(k0, B=2, C=4, H=16, W=16)
    # Larger shape exercising the channel/spatial tiling path (tc=16, ts=2048,
    # cdiv edge block on the spatial axis).
    _check(k1, B=2, C=16, H=48, W=48)
    # bf16: pack-aware channel tile (multiple of 16) + f32 in-kernel math.
    _check(k2, B=2, C=16, H=48, W=48, dtype=jnp.bfloat16, atol=1e-2)
    # Awkward dims (C not a multiple of 8, H*W not a multiple of 128):
    # falls back to full-dim blocks without blowing the VMEM budget.
    _check(k3, B=2, C=6, H=20, W=20)

    print("KERNEL_OK")
</pallas_src>

<mosaic_0001>
module attributes {stable_mosaic.version = 11 : i64} {
  func.func @_noise_injection_kernel(%arg0: i32, %arg1: i32, %arg2: i32, %arg3: memref<1xf32, #tpu.memory_space<smem>>, %arg4: memref<1x4x128xf32, #tpu.memory_space<vmem>>, %arg5: memref<1x1x128xf32, #tpu.memory_space<vmem>>, %arg6: memref<1x4x128xf32, #tpu.memory_space<vmem>>) attributes {dimension_semantics = [#tpu.dimension_semantics<parallel>, #tpu.dimension_semantics<parallel>, #tpu.dimension_semantics<parallel>], iteration_bounds = array<i64: 2, 2, 1>, scalar_prefetch = 0 : i64, scratch_operands = 0 : i64, tpu.core_type = #tpu.core_type<tc>, window_params = [{transform_indices = @transform_0, window_bounds = array<i64: 1>}, {transform_indices = @transform_1, window_bounds = array<i64: 1, 4, 128>}, {transform_indices = @transform_2, window_bounds = array<i64: 1, 1, 128>}, {transform_indices = @transform_3, window_bounds = array<i64: 1, 4, 128>}]} {
    %c0 = arith.constant 0 : index
    %0 = memref.load %arg3[%c0] : memref<1xf32, #tpu.memory_space<smem>>
    %c0_0 = arith.constant 0 : index
    %c0_1 = arith.constant 0 : index
    %c0_2 = arith.constant 0 : index
    %1 = vector.load %arg4[%c0_0, %c0_1, %c0_2] : memref<1x4x128xf32, #tpu.memory_space<vmem>>, vector<1x4x128xf32>
    %c0_3 = arith.constant 0 : index
    %c0_4 = arith.constant 0 : index
    %c0_5 = arith.constant 0 : index
    %2 = vector.load %arg5[%c0_3, %c0_4, %c0_5] : memref<1x1x128xf32, #tpu.memory_space<vmem>>, vector<1x1x128xf32>
    %3 = vector.broadcast %0 : f32 to vector<1x1x128xf32>
    %4 = arith.mulf %3, %2 : vector<1x1x128xf32>
    %5 = vector.broadcast %4 : vector<1x1x128xf32> to vector<1x4x128xf32>
    %6 = arith.addf %1, %5 : vector<1x4x128xf32>
    %c0_6 = arith.constant 0 : index
    %c0_7 = arith.constant 0 : index
    %c0_8 = arith.constant 0 : index
    %7 = vector.load %arg6[%c0_6, %c0_7, %c0_8] : memref<1x4x128xf32, #tpu.memory_space<vmem>>, vector<1x4x128xf32>
    tpu.vector_store %arg6[%c0_6, %c0_7, %c0_8], %6 {strides = array<i32>} : memref<1x4x128xf32, #tpu.memory_space<vmem>>, vector<1x4x128xf32>,
    return
  }
  func.func @transform_0(%arg0: i32, %arg1: i32, %arg2: i32) -> i32 {
    %c0_i32 = arith.constant 0 : i32
    %c0_i32_0 = arith.constant 0 : i32
    return %c0_i32 : i32
  }
  func.func @transform_1(%arg0: i32, %arg1: i32, %arg2: i32) -> (i32, i32, i32) {
    %c0_i32 = arith.constant 0 : i32
    return %arg0, %arg2, %arg1 : i32, i32, i32
  }
  func.func @transform_2(%arg0: i32, %arg1: i32, %arg2: i32) -> (i32, i32, i32) {
    %c0_i32 = arith.constant 0 : i32
    %c0_i32_0 = arith.constant 0 : i32
    return %arg0, %c0_i32, %arg1 : i32, i32, i32
  }
  func.func @transform_3(%arg0: i32, %arg1: i32, %arg2: i32) -> (i32, i32, i32) {
    %c0_i32 = arith.constant 0 : i32
    return %arg0, %arg2, %arg1 : i32, i32, i32
  }
}

</mosaic_0001>

<bundles_post_ra>
// kernel: tpu_custom_call.1
= control target key start
LH: loop header
LB: loop body
LE: loop exit
PB: predicated region body
PF: predicated region fallthrough
CT: control target
= control target key end

     0   :  { %s847_s0 = inlined_call_operand.<no memory space> [shape: f32[1], index: 0, kind: input, shape index: {}]   ;;  %s848_s1 = inlined_call_operand.hbm [shape: f32[2,4,256], index: 1, kind: input, shape index: {}]   ;;  %s849_s2 = inlined_call_operand.hbm [shape: f32[2,1,256], index: 2, kind: input, shape index: {}]   ;;  %s850_s3 = inlined_call_operand.hbm [shape: f32[2,4,256], index: 3, kind: output, shape index: {}]  }
   0x1   :  { %8 = sst [smem:[#allocation2]] %s847_s0 }
   0x2   :  { %9 = vsyncpa [#allocation4], 0 }
   0x3   :  { %11 = vsyncpa [#allocation4 + $0x1], 0 }
   0x4   :  { %12 = vsyncpa [#allocation7], 0 }
   0x5   :  { %14 = vsyncpa [#allocation7 + $0x1], 0 }
   0x6   :  { %15 = vsyncpa [#allocation5], 0 }
   0x7   :  { %17 = vsyncpa [#allocation5 + $0x1], 0  ;;  %s688_s14 = smov 0   ;;  %s690_s15 = smov 0  }
   0x8   :  { %s692_s16 = smov 0   ;;  %s694_s17 = smov 0  }
   0x9   :  { %s696_s18 = smov 0   ;;  %s698_s19 = smov 0  }
   0xa   :  { %s700_s20 = smov 0   ;;  %s702_s0 = smov 0  }
   0xb LB: > { %s402_s21 = sadd.s32 4294967295, %s663_s0   ;;  %s403_s22 = sadd.s32 4294967294, %s663_s0   ;;  %s663_s0 = sphi %s702_s0, %s23_s0   ;;  %s659_s20 = sphi %s700_s20, %s862_s20   ;;  %s655_s19 = sphi %s698_s19, %s861_s19   ;;  %s651_s18 = sphi %s696_s18, %s860_s18   ;;  %s647_s17 = sphi %s694_s17, %s859_s17   ;;  %s643_s16 = sphi %s692_s16, %s858_s16   ;;  %s639_s15 = sphi %s690_s15, %s857_s15   ;;  %s635_s14 = sphi %s688_s14, %s856_s14  }
   0xc   : > { %s38_s23 = sadd.s32 1, %s655_s19  ;;  %s42_s24 = sadd.s32 1, %s659_s20 }
   0xd   : > { %p40_p0 = scmp.ge.s32.totalorder %s38_s23, 2  ;;  %s74_s25 = sadd.s32 1, %s643_s16 }
   0xe   : > { %p81_p1 = scmp.ne.s32.totalorder %s643_s16, %s639_s15  ;;  %p82_p2 = scmp.eq.s32.totalorder %s663_s0, 0 }
   0xf   : > { %s864_s23 = smov (%p40_p0, %s38_s23), 0  ;;  %s866_s24 = smov (!%p40_p0, %s42_s24), %s659_s20 }
  0x10   : > { %s70_s26 = ssub.s32 %s655_s19, %s864_s23  ;;  %p741_p3 = por %p82_p2, %p81_p1 }
  0x11   : > { %p44_p4 = scmp.ge.s32.totalorder %s866_s24, 2  ;;  %p87_p5 = scmp.ne.s32.totalorder %s639_s15, %s635_s14 }
  0x12   : > { %p88_p6 = scmp.eq.s32.totalorder %s402_s21, 0  ;;  %p143_p7 = scmp.eq.s32.totalorder %s402_s21, 3 }
  0x13   : > { %s868_s24 = smov (%p44_p4, %s866_s24), 0  ;;  %p149_p10 = scmp.eq.s32.totalorder %s403_s22, 3 }
  0x14   : > { %p749_p8 = por %p88_p6, %p87_p5  ;;  %p753_p9 = por %p143_p7, %p81_p1 }
  0x15   : > { %s67_s30 = ssub.s32 %s659_s20, %s868_s24  ;;  %p759_p12 = por %p149_p10, %p87_p5 }
  0x16   : > { %s71_s4 = sor.u32 %s70_s26, %s67_s30  ;;  %p435_p13 = scmp.lt.s32.totalorder %s663_s0, 4 }
  0x17   : > { %p72_p11 = scmp.eq.s32.totalorder %s71_s4, 0  ;;  %s172_s6 = sand.u32 1, %s643_s16  }
  0x18   : > { %s406_s8 = sshll.u32 %s172_s6, 2  ;;  %s407_s9 = sshll.u32 %s659_s20, 1 }
  0x19   : > { %s766_s7 = scalar_select %p72_p11, %s643_s16, %s74_s25  }
  0x1a   : > { %s182_s10 = sadd.s32 %s655_s19, %s407_s9  ;;  %s176_s11 = scalar_lea.vmem [#allocation3], %s406_s8 }
  0x1b   : > { %s188_s12 = sshll.u32 %s176_s11, 4  ;;  %s408_s13 = sshll.u32 %s182_s10, 2  ;;  %s189_s12 = int_to_ptr.vmem [resolvable:$true] %s188_s12 }
  0x1c   : > { %s184_s26 = scalar_lea.hbm %s848_s1, %s408_s13  ;;  %p775_p0 = pnand %p435_p13, %p741_p3 }
  0x1d   : > { %s186_s25 = sshll.u32 %s184_s26, 4  ;;  %p410_p1 = scmp.ge.s32.totalorder %s663_s0, 1  ;;  %s187_s25 = int_to_ptr.hbm [resolvable:$true] %s186_s25 }
  0x1e   : > { %s173_s4 = scalar_lea.sflag [#allocation4], %s172_s6  ;;  %p212_p2 = scmp.lt.s32.totalorder %s663_s0, 5 }
  0x1f   : > { %427 = dma.hbm_to_vmem [thread:$0]  (!%p775_p0), %s187_s25, 64, %s189_s12, %s173_s4  }
  0x20   : > { %s203_s11 = scalar_lea.hbm %s849_s2, %s182_s10  ;;  %p213_p4 = pnand %p410_p1, %p212_p2 }
  0x21   : > { %s205_s13 = sshll.u32 %s203_s11, 4  ;;  %s198_s27 = scalar_lea.vmem [#allocation6], %s172_s6  ;;  %s206_s13 = int_to_ptr.hbm [resolvable:$true] %s205_s13 }
  0x22   : > { %s207_s21 = sshll.u32 %s198_s27, 4  ;;  %s196_s22 = scalar_lea.sflag [#allocation7], %s172_s6  ;;  %s208_s21 = int_to_ptr.vmem [resolvable:$true] %s207_s21 }
  0x23   : > { %430 = dma.hbm_to_vmem [thread:$0]  (!%p775_p0), %s206_s13, 16, %s208_s21, %s196_s22  }
  0x24   : > { %216 = sbr.rel (%p213_p4) target bundleno = 61 (0x3d), region = 32  ;;  %s789_s26 = sand.u32 (!%p213_p4), 1, %s639_s15  }
  0x25   : > { %s411_s12 = sshll.u32 (!%p213_p4), %s789_s26, 2  ;;  %s219_s25 = scalar_lea.sflag (!%p213_p4), [#allocation4], %s789_s26 }
  0x26   : > { %s222_s4 = scalar_lea.vmem (!%p213_p4), [#allocation3], %s411_s12 }
  0x29   : > { %622 = dma.done.wait (%p749_p8), %s219_s25, 64  }
  0x2a   : > { %624 = vsyncadd (%p749_p8), %s219_s25, 4294967232  ;;  %s229_s6 = scalar_lea.sflag [#allocation7], %s789_s26  ;;  %s231_s10 = scalar_lea.vmem [#allocation6], %s789_s26 }
  0x2b   : > { %626 = dma.done.wait (%p749_p8), %s229_s6, 16  }
  0x2c   : > { %628 = vsyncadd (%p749_p8), %s229_s6, 4294967280  ;;  %s259_s30 = sld [smem:[#allocation2]]  ;;  %s414_s8 = sshll.u32 %s651_s18, 1  ;;  %v261_v1 = vld [vmem:[%s231_s10] sm:$0x1] }
  0x2d   : > { %s282_s9 = sadd.s32 %s647_s17, %s414_s8  ;;  %v260_v3 = vld [vmem:[%s222_s4] sm:$0xf]  ;;  %s258_s22 = scalar_lea.vmem [#allocation8], %s411_s12 }
  0x2e   : > { %s415_s11 = sshll.u32 %s282_s9, 2  ;;  %s286_s25 = sshll.u32 %s258_s22, 4  ;;  %s287_s25 = int_to_ptr.vmem [resolvable:$true] %s286_s25 }
  0x2f   : > { %s284_s21 = scalar_lea.hbm %s850_s3, %s415_s11  ;;  %s270_s18 = scalar_lea.sflag [#allocation5], %s789_s26 }
  0x30   : > { %s288_s28 = sshll.u32 %s284_s21, 4  ;;  %s581_s4 = scalar_lea.hbm %s850_s3, 16  ;;  %s289_s28 = int_to_ptr.hbm [resolvable:$true] %s288_s28 }
  0x31   : > { %s575_s17 = sshra.s32 %s289_s28, 4  ;;  %s576_s17 = int_to_ptr.hbm [resolvable:$true] %s575_s17 }
  0x32   : > { %v262_v0 = vstv %s259_s30  ;;  %s577_s6 = scalar_lea.hbm %s576_s17, 4  ;;  %p582_p7 = scmp.lt.s32.totalorder %s576_s17, %s850_s3 }
  0x33   : > { %v263_v2 = vmul.f32 %v262_v0, %v261_v1  ;;  %p578_p3 = scmp.ne.s32.totalorder %s576_s17, %s577_s6  ;;  %p583_p8 = scmp.lt.s32.totalorder %s581_s4, %s577_s6 }
  0x35   : > { %v265_v4 = vperm.slane %v263_v2, 0  ;;  %p579_p5 = pnand %p578_p3, %p753_p9  ;;  %p584_p10 = por %p583_p8, %p582_p7 }
  0x37   : > { %v267_v5 = vadd.f32 %v265_v4, %v260_v3  ;;  %p580_p6 = pneg %p579_p5 }
  0x39   : > { %268 = vst [vmem:[%s258_s22] sm:$0xf] %v267_v5  ;;  %p585_p11 = pnand %p584_p10, %p580_p6 }
  0x3b   : > { %588 = shalt.err (!%p585_p11)
}
  0x3c   : > { %422 = dma.vmem_to_hbm [thread:$0]  (%p753_p9), %s287_s25, 64, %s289_s28, %s270_s18  }
  0x3d PF: > { %p436_p13 = scmp.ge.s32.totalorder %s663_s0, 2  ;;  %s300_s26 = sand.u32 1, %s635_s14  }
  0x3e   : > { %s301_s9 = scalar_lea.sflag [#allocation5], %s300_s26 }
  0x3f   : > { %p432_p0 = pnand %p436_p13, %p759_p12 }
  0x41   : > { %p433_p1 = pneg %p432_p0 }
  0x43   : > { %630 = dma.done.wait (%p433_p1), %s301_s9, 64  }
  0x44   : > { %632 = vsyncadd (%p433_p1), %s301_s9, 4294967232  ;;  %s23_s0 = sadd.s32 1, %s663_s0   ;;  %s856_s14 = smov %s639_s15 }
  0x45   : > { %p20_p2 = scmp.ge.s32.totalorder %s23_s0, 6   ;;  %s857_s15 = smov %s643_s16 }
  0x46   : > { %s858_s16 = smov %s766_s7  ;;  %s859_s17 = smov %s655_s19 }
  0x47   : > { %s860_s18 = smov %s659_s20  ;;  %s861_s19 = smov %s864_s23 }
  0x48   : > { %s862_s20 = smov %s868_s24  ;;  %22 = sbr.rel (!%p20_p2) target bundleno = 11 (0xb), region = 90 }
  0x4d   :  { %307 = vsyncpa [#allocation4], 1 }
  0x4e   :  { %309 = vsyncpa [#allocation4 + $0x1], 1 }
  0x4f   :  { %310 = vsyncpa [#allocation7], 1 }
  0x50   :  { %312 = vsyncpa [#allocation7 + $0x1], 1 }
  0x51   :  { %313 = vsyncpa [#allocation5], 1 }
  0x52   :  { %315 = vsyncpa [#allocation5 + $0x1], 1 }

</bundles_post_ra>
